<compile_context>
chip_gen: v5e
topology: v5e:2x2
jax: 0.10.0
libtpu: 0.0.40
codegen_flags: <defaults>
</compile_context>

<pallas_src>
import math

import jax
import jax.numpy as jnp
from jax import lax
from jax.experimental import pallas as pl
from jax.experimental.pallas import tpu as pltpu

EPS = 10e-4  # matches normalize_coordinate / normalize_3d_coordinate

_PLANE_AXES = {'xz': (0, 2), 'xy': (0, 1), 'yz': (1, 2)}


def _hat(d):
    # bilinear tent weight: max(0, 1 - |d|)
    return jnp.maximum(0.0, 1.0 - jnp.abs(d))


def _normalize(x, padding):
    # normalize_coordinate / normalize_3d_coordinate (elementwise-equivalent)
    xn = x / (1.0 + padding + EPS) + 0.5
    xn = jnp.where(xn >= 1.0, 1.0 - EPS, xn)
    xn = jnp.where(xn < 0.0, 0.0, xn)
    return xn


def _make_kernel(grid_size, plane_keys, plane_sizes, padding):
    """grid_size: (D,H,W) or None; plane_keys: tuple of 2D keys; plane_sizes: key->(H,W)."""
    has_grid = grid_size is not None

    def kernel(*refs):
        i = 0
        pT_ref = refs[i]; i += 1
        grid_ref = None
        planes_ref = None
        if has_grid:
            grid_ref = refs[i]; i += 1          # (1, D, H*W)  folded 3D slab
        if plane_keys:
            planes_ref = refs[i]; i += 1        # (1, Hsum, Wsum) block-diag 2D slab
        tail_ref = refs[i]; i += 1              # SMEM (4,): [w_p0, w_p1, w_p2, bias]
        out_ref = refs[i]                       # (1, 1, TQ)

        pT = pT_ref[0]                          # (3, TQ) float32
        tq = pT.shape[1]
        pn = _normalize(pT, padding)            # shared by all keys

        # fc: point part + bias (scalars from SMEM, broadcast on the VPU)
        acc = (tail_ref[0] * pT[0:1, :]
               + tail_ref[1] * pT[1:2, :]
               + tail_ref[2] * pT[2:3, :]
               + tail_ref[3])                   # (1, TQ)

        def axis_weights(coord_row, size):
            # hat weights of every grid line against every query: (size, TQ)
            idx = lax.broadcasted_iota(jnp.int32, (size, 1), 0).astype(jnp.float32)
            return _hat(coord_row * (size - 1) - idx)

        if has_grid:
            # grid_sample 3D: sample coords are (x, y, z) -> (W, H, D)
            D, H, W = grid_size
            wx = axis_weights(pn[0:1, :], W)    # (W, TQ)
            wy = axis_weights(pn[1:2, :], H)    # (H, TQ)
            wz = axis_weights(pn[2:3, :], D)    # (D, TQ)
            # Kron weights over the (H, W) footprint, built once per tile.
            wyx = (wy[:, None, :] * wx[None, :, :]).reshape(H * W, tq)   # (H*W, TQ)
            # MXU contraction over H*W (lane-dense K), then finish D on the VPU/XLU.
            a = jnp.dot(grid_ref[0], wyx,
                        preferred_element_type=jnp.float32)              # (D, TQ)
            acc = acc + jnp.sum(a * wz, axis=0, keepdims=True)           # (1, TQ)

        if plane_keys:
            # All 2D planes fused: block-diagonal slab x stacked tents -> one matmul.
            wx_list, wy_list = [], []
            for key in plane_keys:
                H, W = plane_sizes[key]
                xi, yi = _PLANE_AXES[key]
                wx_list.append(axis_weights(pn[xi:xi + 1, :], W))   # (W_k, TQ)
                wy_list.append(axis_weights(pn[yi:yi + 1, :], H))   # (H_k, TQ)
            wxs = jnp.concatenate(wx_list, axis=0)                  # (Wsum, TQ)
            wys = jnp.concatenate(wy_list, axis=0)                  # (Hsum, TQ)
            a = jnp.dot(planes_ref[0], wxs,
                        preferred_element_type=jnp.float32)         # (Hsum, TQ)
            acc = acc + jnp.sum(a * wys, axis=0, keepdims=True)     # (1, TQ)

        out_ref[...] = acc[None].astype(out_ref.dtype)              # (1, 1, TQ)

    return kernel


def fc_decoder_forward(p, c_plane, fc_w, fc_b, padding=0.1, tq=1024):
    """p: (B, T, 3); c_plane: dict with any of 'grid','xz','xy','yz';
    fc_w: (c_dim + 3, 1) (transposed nn.Linear weight); fc_b: (1,)."""
    p = p.astype(jnp.float32)
    B, T, _ = p.shape
    c_dim = fc_w.shape[0] - 3
    fc_w = fc_w.astype(jnp.float32)
    w_c = fc_w[:c_dim, 0]                                # (c_dim,)
    w_p = fc_w[c_dim:, 0]                                # (3,)
    tail = jnp.concatenate([w_p, fc_b.reshape(1).astype(jnp.float32)])  # (4,)

    # FC-weight fold at DEFAULT precision (heaviest HBM op; HIGHEST was 3-6x MXU cost).
    def fold(c_flat):
        return jnp.einsum('bcs,c->bs', c_flat, w_c)

    grid_size = None
    grid_proj = None
    if 'grid' in c_plane:
        c = c_plane['grid'].astype(jnp.float32)
        _, C, D, H, W = c.shape
        grid_size = (D, H, W)
        # (B, D, H*W): lane dim is H*W -> lane-dense VMEM block, full MXU K fill.
        grid_proj = fold(c.reshape(B, C, D * H * W)).reshape(B, D, H * W)

    plane_keys = tuple(k for k in ('xz', 'xy', 'yz') if k in c_plane)
    plane_sizes = {}
    planes_slab = None
    if plane_keys:
        projs = []
        for k in plane_keys:
            c = c_plane[k].astype(jnp.float32)
            _, C, H, W = c.shape
            plane_sizes[k] = (H, W)
            projs.append(fold(c.reshape(B, C, H * W)).reshape(B, H, W))
        Hsum = sum(plane_sizes[k][0] for k in plane_keys)
        Wsum = sum(plane_sizes[k][1] for k in plane_keys)
        # Block-diagonal packing so one (Hsum, Wsum) @ (Wsum, TQ) matmul covers all planes.
        planes_slab = jnp.zeros((B, Hsum, Wsum), jnp.float32)
        ho = wo = 0
        for k, proj in zip(plane_keys, projs):
            H, W = plane_sizes[k]
            planes_slab = planes_slab.at[:, ho:ho + H, wo:wo + W].set(proj)
            ho += H
            wo += W

    # Query tile: lane-dense multiple of 128, big enough to amortize the
    # ~0.35us/grid-step overhead, never larger than the padded T.
    tq = max(128, (int(tq) // 128) * 128)
    tq = min(tq, 128 * pl.cdiv(T, 128))
    if B == 1 and T > 128:
        # keep nt >= 2 so the second TensorCore (v7x megacore) gets work
        tq = min(tq, max(128, 128 * pl.cdiv(pl.cdiv(T, 2), 128)))

    nt = pl.cdiv(T, tq)
    t_pad = nt * tq
    pT = jnp.transpose(p, (0, 2, 1))                     # (B, 3, T)
    if t_pad != T:
        pT = jnp.pad(pT, ((0, 0), (0, 0), (0, t_pad - T)))

    kernel = _make_kernel(grid_size, plane_keys, plane_sizes, padding)

    inputs = [pT]
    in_specs = [pl.BlockSpec((1, 3, tq), lambda b, t: (b, 0, t))]
    if grid_proj is not None:
        D, H, W = grid_size
        inputs.append(grid_proj)
        # independent of the T grid index -> slab DMA'd once per batch element
        in_specs.append(pl.BlockSpec((1, D, H * W), lambda b, t: (b, 0, 0)))
    if planes_slab is not None:
        Hs, Ws = planes_slab.shape[1], planes_slab.shape[2]
        inputs.append(planes_slab)
        in_specs.append(pl.BlockSpec((1, Hs, Ws), lambda b, t: (b, 0, 0)))
    inputs.append(tail)
    in_specs.append(pl.BlockSpec(memory_space=pltpu.MemorySpace.SMEM))

    out = pl.pallas_call(
        kernel,
        out_shape=jax.ShapeDtypeStruct((B, 1, t_pad), jnp.float32),
        grid=(B, nt),
        in_specs=in_specs,
        out_specs=pl.BlockSpec((1, 1, tq), lambda b, t: (b, 0, t)),
        compiler_params=pltpu.CompilerParams(
            dimension_semantics=("parallel", "parallel"),
            vmem_limit_bytes=32 * 1024 * 1024),
    )(*inputs)
    return out[:, 0, :T]                                 # (B, T)


# ---------------- pure-JAX reference (gather-based grid_sample) ----------------

def _grid_sample_2d_ref(c, xp, yp):
    B, C, H, W = c.shape
    x0 = jnp.clip(jnp.floor(xp), 0, W - 1); x1 = jnp.clip(x0 + 1, 0, W - 1)
    y0 = jnp.clip(jnp.floor(yp), 0, H - 1); y1 = jnp.clip(y0 + 1, 0, H - 1)
    wx1, wy1 = xp - x0, yp - y0
    wx0, wy0 = 1.0 - wx1, 1.0 - wy1

    def gather(yi, xi):
        return jax.vmap(lambda cb, yb, xb: cb[:, yb, xb].T)(
            c, yi.astype(jnp.int32), xi.astype(jnp.int32))   # (B, T, C)

    return (gather(y0, x0) * (wy0 * wx0)[..., None]
            + gather(y0, x1) * (wy0 * wx1)[..., None]
            + gather(y1, x0) * (wy1 * wx0)[..., None]
            + gather(y1, x1) * (wy1 * wx1)[..., None])


def _grid_sample_3d_ref(c, xp, yp, zp):
    B, C, D, H, W = c.shape
    x0 = jnp.clip(jnp.floor(xp), 0, W - 1); x1 = jnp.clip(x0 + 1, 0, W - 1)
    y0 = jnp.clip(jnp.floor(yp), 0, H - 1); y1 = jnp.clip(y0 + 1, 0, H - 1)
    z0 = jnp.clip(jnp.floor(zp), 0, D - 1); z1 = jnp.clip(z0 + 1, 0, D - 1)
    wx1, wy1, wz1 = xp - x0, yp - y0, zp - z0
    wx0, wy0, wz0 = 1.0 - wx1, 1.0 - wy1, 1.0 - wz1

    def gather(zi, yi, xi):
        return jax.vmap(lambda cb, zb, yb, xb: cb[:, zb, yb, xb].T)(
            c, zi.astype(jnp.int32), yi.astype(jnp.int32), xi.astype(jnp.int32))

    out = 0.0
    for zi, wz in ((z0, wz0), (z1, wz1)):
        for yi, wy in ((y0, wy0), (y1, wy1)):
            for xi, wx in ((x0, wx0), (x1, wx1)):
                out = out + gather(zi, yi, xi) * (wz * wy * wx)[..., None]
    return out


def _reference(p, c_plane, fc_w, fc_b, padding=0.1):
    B, T, _ = p.shape
    c_dim = fc_w.shape[0] - 3
    csum = jnp.zeros((B, T, c_dim), jnp.float32)
    if 'grid' in c_plane:
        c = c_plane['grid']
        _, _, D, H, W = c.shape
        pn = _normalize(p, padding)
        csum = csum + _grid_sample_3d_ref(
            c, pn[..., 0] * (W - 1), pn[..., 1] * (H - 1), pn[..., 2] * (D - 1))
    for key, sel in (('xz', (0, 2)), ('xy', (0, 1)), ('yz', (1, 2))):
        if key in c_plane:
            c = c_plane[key]
            _, _, H, W = c.shape
            xy = jnp.stack([p[..., sel[0]], p[..., sel[1]]], axis=-1)
            pn = _normalize(xy, padding)
            csum = csum + _grid_sample_2d_ref(
                c, pn[..., 0] * (W - 1), pn[..., 1] * (H - 1))
    feat = jnp.concatenate([csum, p], axis=-1)
    return (jnp.einsum('btf,fo->bto', feat, fc_w,
                       precision=lax.Precision.HIGHEST) + fc_b)[..., 0]


if __name__ == "__main__":
    B, T, c_dim = 2, 500, 16          # T=500 exercises the pad-to-TQ path
    D = Hg = Wg = 8                   # 3D feature grid
    Hp = Wp = 16                      # 2D feature planes
    padding = 0.1

    key = jax.random.PRNGKey(0)
    ks = jax.random.split(key, 7)
    p = jax.random.uniform(ks[0], (B, T, 3), jnp.float32, minval=-0.5, maxval=0.5)
    c_plane = {
        'grid': jax.random.normal(ks[1], (B, c_dim, D, Hg, Wg), jnp.float32),
        'xz':   jax.random.normal(ks[2], (B, c_dim, Hp, Wp), jnp.float32),
        'xy':   jax.random.normal(ks[3], (B, c_dim, Hp, Wp), jnp.float32),
        'yz':   jax.random.normal(ks[4], (B, c_dim, Hp, Wp), jnp.float32),
    }
    # nn.Linear(c_dim + 3, 1) parameters, deterministic init
    bound = 1.0 / math.sqrt(c_dim + 3)
    fc_w = jax.random.uniform(ks[5], (c_dim + 3, 1), jnp.float32,
                              minval=-bound, maxval=bound)
    fc_b = jax.random.uniform(ks[6], (1,), jnp.float32,
                              minval=-bound, maxval=bound)

    out = fc_decoder_forward(p, c_plane, fc_w, fc_b, padding=padding)
    out = jax.block_until_ready(out)

    ref = _reference(p, c_plane, fc_w, fc_b, padding=padding)
    assert out.shape == (B, T), out.shape
    # Tolerance accounts for the (review-sanctioned) default-precision fold einsum.
    assert jnp.allclose(out, ref, atol=2e-2, rtol=2e-2), \
        float(jnp.max(jnp.abs(out - ref)))
    print("KERNEL_OK")
</pallas_src>

<mosaic_0001>
module attributes {stable_mosaic.version = 11 : i64} {
  func.func @kernel(%arg0: i32, %arg1: i32, %arg2: memref<1x3x512xf32, #tpu.memory_space<vmem>>, %arg3: memref<1x8x64xf32, #tpu.memory_space<vmem>>, %arg4: memref<1x48x48xf32, #tpu.memory_space<vmem>>, %arg5: memref<4xf32, #tpu.memory_space<smem>>, %arg6: memref<1x1x512xf32, #tpu.memory_space<vmem>>) attributes {dimension_semantics = [#tpu.dimension_semantics<parallel>, #tpu.dimension_semantics<parallel>], iteration_bounds = array<i64: 2, 1>, scalar_prefetch = 0 : i64, scratch_operands = 0 : i64, tpu.core_type = #tpu.core_type<tc>, window_params = [{transform_indices = @transform_0, window_bounds = array<i64: 1, 3, 512>}, {transform_indices = @transform_1, window_bounds = array<i64: 1, 8, 64>}, {transform_indices = @transform_2, window_bounds = array<i64: 1, 48, 48>}, {transform_indices = @transform_3, window_bounds = array<i64: 4>}, {transform_indices = @transform_4, window_bounds = array<i64: 1, 1, 512>}]} {
    %c0 = arith.constant 0 : index
    %c0_0 = arith.constant 0 : index
    %c0_1 = arith.constant 0 : index
    %0 = vector.load %arg2[%c0, %c0_0, %c0_1] : memref<1x3x512xf32, #tpu.memory_space<vmem>>, vector<1x3x512xf32>
    %1 = vector.shape_cast %0 : vector<1x3x512xf32> to vector<3x512xf32>
    %cst = arith.constant 1.101000e+00 : f32
    %2 = vector.broadcast %cst : f32 to vector<3x512xf32>
    %3 = arith.divf %1, %2 : vector<3x512xf32>
    %cst_2 = arith.constant 5.000000e-01 : f32
    %4 = vector.broadcast %cst_2 : f32 to vector<3x512xf32>
    %5 = arith.addf %3, %4 : vector<3x512xf32>
    %cst_3 = arith.constant 1.000000e+00 : f32
    %6 = vector.broadcast %cst_3 : f32 to vector<3x512xf32>
    %7 = arith.cmpf oge, %5, %6 : vector<3x512xf32>
    %cst_4 = arith.constant 9.990000e-01 : f32
    %8 = vector.broadcast %cst_4 : f32 to vector<3x512xf32>
    %9 = arith.select %7, %8, %5 : vector<3x512xi1>, vector<3x512xf32>
    %cst_5 = arith.constant 0.000000e+00 : f32
    %10 = vector.broadcast %cst_5 : f32 to vector<3x512xf32>
    %11 = arith.cmpf olt, %9, %10 : vector<3x512xf32>
    %cst_6 = arith.constant 0.000000e+00 : f32
    %12 = vector.broadcast %cst_6 : f32 to vector<3x512xf32>
    %13 = arith.select %11, %12, %9 : vector<3x512xi1>, vector<3x512xf32>
    %c0_7 = arith.constant 0 : index
    %14 = memref.load %arg5[%c0_7] : memref<4xf32, #tpu.memory_space<smem>>
    %15 = vector.extract_strided_slice %1 {offsets = [0, 0], sizes = [1, 512], strides = [1, 1]} : vector<3x512xf32> to vector<1x512xf32>
    %16 = vector.broadcast %14 : f32 to vector<1x512xf32>
    %17 = arith.mulf %16, %15 : vector<1x512xf32>
    %c1 = arith.constant 1 : index
    %18 = memref.load %arg5[%c1] : memref<4xf32, #tpu.memory_space<smem>>
    %19 = vector.extract_strided_slice %1 {offsets = [1, 0], sizes = [1, 512], strides = [1, 1]} : vector<3x512xf32> to vector<1x512xf32>
    %20 = vector.broadcast %18 : f32 to vector<1x512xf32>
    %21 = arith.mulf %20, %19 : vector<1x512xf32>
    %22 = arith.addf %17, %21 : vector<1x512xf32>
    %c2 = arith.constant 2 : index
    %23 = memref.load %arg5[%c2] : memref<4xf32, #tpu.memory_space<smem>>
    %24 = vector.extract_strided_slice %1 {offsets = [2, 0], sizes = [1, 512], strides = [1, 1]} : vector<3x512xf32> to vector<1x512xf32>
    %25 = vector.broadcast %23 : f32 to vector<1x512xf32>
    %26 = arith.mulf %25, %24 : vector<1x512xf32>
    %27 = arith.addf %22, %26 : vector<1x512xf32>
    %c3 = arith.constant 3 : index
    %28 = memref.load %arg5[%c3] : memref<4xf32, #tpu.memory_space<smem>>
    %29 = vector.broadcast %28 : f32 to vector<1x512xf32>
    %30 = arith.addf %27, %29 : vector<1x512xf32>
    %31 = vector.extract_strided_slice %13 {offsets = [0, 0], sizes = [1, 512], strides = [1, 1]} : vector<3x512xf32> to vector<1x512xf32>
    %32 = tpu.iota {dimensions = array<i32: 0>} : vector<8x1xi32>
    %33 = arith.sitofp %32 : vector<8x1xi32> to vector<8x1xf32>
    %cst_8 = arith.constant 7.000000e+00 : f32
    %34 = vector.broadcast %cst_8 : f32 to vector<1x512xf32>
    %35 = arith.mulf %31, %34 : vector<1x512xf32>
    %36 = vector.broadcast %35 : vector<1x512xf32> to vector<8x512xf32>
    %37 = vector.broadcast %33 : vector<8x1xf32> to vector<8x512xf32>
    %38 = arith.subf %36, %37 : vector<8x512xf32>
    %39 = math.absf %38 : vector<8x512xf32>
    %cst_9 = arith.constant 1.000000e+00 : f32
    %40 = vector.broadcast %cst_9 : f32 to vector<8x512xf32>
    %41 = arith.subf %40, %39 : vector<8x512xf32>
    %cst_10 = arith.constant 0.000000e+00 : f32
    %42 = vector.broadcast %cst_10 : f32 to vector<8x512xf32>
    %43 = arith.maximumf %42, %41 : vector<8x512xf32>
    %44 = vector.extract_strided_slice %13 {offsets = [1, 0], sizes = [1, 512], strides = [1, 1]} : vector<3x512xf32> to vector<1x512xf32>
    %45 = tpu.iota {dimensions = array<i32: 0>} : vector<8x1xi32>
    %46 = arith.sitofp %45 : vector<8x1xi32> to vector<8x1xf32>
    %cst_11 = arith.constant 7.000000e+00 : f32
    %47 = vector.broadcast %cst_11 : f32 to vector<1x512xf32>
    %48 = arith.mulf %44, %47 : vector<1x512xf32>
    %49 = vector.broadcast %48 : vector<1x512xf32> to vector<8x512xf32>
    %50 = vector.broadcast %46 : vector<8x1xf32> to vector<8x512xf32>
    %51 = arith.subf %49, %50 : vector<8x512xf32>
    %52 = math.absf %51 : vector<8x512xf32>
    %cst_12 = arith.constant 1.000000e+00 : f32
    %53 = vector.broadcast %cst_12 : f32 to vector<8x512xf32>
    %54 = arith.subf %53, %52 : vector<8x512xf32>
    %cst_13 = arith.constant 0.000000e+00 : f32
    %55 = vector.broadcast %cst_13 : f32 to vector<8x512xf32>
    %56 = arith.maximumf %55, %54 : vector<8x512xf32>
    %57 = vector.extract_strided_slice %13 {offsets = [2, 0], sizes = [1, 512], strides = [1, 1]} : vector<3x512xf32> to vector<1x512xf32>
    %58 = tpu.iota {dimensions = array<i32: 0>} : vector<8x1xi32>
    %59 = arith.sitofp %58 : vector<8x1xi32> to vector<8x1xf32>
    %cst_14 = arith.constant 7.000000e+00 : f32
    %60 = vector.broadcast %cst_14 : f32 to vector<1x512xf32>
    %61 = arith.mulf %57, %60 : vector<1x512xf32>
    %62 = vector.broadcast %61 : vector<1x512xf32> to vector<8x512xf32>
    %63 = vector.broadcast %59 : vector<8x1xf32> to vector<8x512xf32>
    %64 = arith.subf %62, %63 : vector<8x512xf32>
    %65 = math.absf %64 : vector<8x512xf32>
    %cst_15 = arith.constant 1.000000e+00 : f32
    %66 = vector.broadcast %cst_15 : f32 to vector<8x512xf32>
    %67 = arith.subf %66, %65 : vector<8x512xf32>
    %cst_16 = arith.constant 0.000000e+00 : f32
    %68 = vector.broadcast %cst_16 : f32 to vector<8x512xf32>
    %69 = arith.maximumf %68, %67 : vector<8x512xf32>
    %70 = vector.shape_cast %56 : vector<8x512xf32> to vector<8x1x512xf32>
    %71 = vector.shape_cast %43 : vector<8x512xf32> to vector<1x8x512xf32>
    %72 = vector.broadcast %70 : vector<8x1x512xf32> to vector<8x8x512xf32>
    %73 = vector.broadcast %71 : vector<1x8x512xf32> to vector<8x8x512xf32>
    %74 = arith.mulf %72, %73 : vector<8x8x512xf32>
    %75 = vector.shape_cast %74 : vector<8x8x512xf32> to vector<64x512xf32>
    %c0_17 = arith.constant 0 : index
    %c0_18 = arith.constant 0 : index
    %c0_19 = arith.constant 0 : index
    %76 = vector.load %arg3[%c0_17, %c0_18, %c0_19] : memref<1x8x64xf32, #tpu.memory_space<vmem>>, vector<1x8x64xf32>
    %77 = vector.shape_cast %76 : vector<1x8x64xf32> to vector<8x64xf32>
    %cst_20 = arith.constant dense<0.000000e+00> : vector<8x512xf32>
    %78 = tpu.matmul %77, %75, %cst_20 {dimension_numbers = #tpu.dot_dimension_numbers<[1], [0], [0], [1], [0, 0, 1, 1], [], []>} : vector<8x64xf32>, vector<64x512xf32>, vector<8x512xf32> -> vector<8x512xf32>
    %79 = arith.mulf %78, %69 : vector<8x512xf32>
    %cst_21 = arith.constant dense<0.000000e+00> : vector<512xf32>
    %80 = vector.multi_reduction <add>, %79, %cst_21 [0] : vector<8x512xf32> to vector<512xf32>
    %81 = vector.shape_cast %80 : vector<512xf32> to vector<1x512xf32>
    %82 = arith.addf %30, %81 : vector<1x512xf32>
    %83 = vector.extract_strided_slice %13 {offsets = [0, 0], sizes = [1, 512], strides = [1, 1]} : vector<3x512xf32> to vector<1x512xf32>
    %84 = tpu.iota {dimensions = array<i32: 0>} : vector<16x1xi32>
    %85 = arith.sitofp %84 : vector<16x1xi32> to vector<16x1xf32>
    %cst_22 = arith.constant 1.500000e+01 : f32
    %86 = vector.broadcast %cst_22 : f32 to vector<1x512xf32>
    %87 = arith.mulf %83, %86 : vector<1x512xf32>
    %88 = vector.broadcast %87 : vector<1x512xf32> to vector<16x512xf32>
    %89 = vector.broadcast %85 : vector<16x1xf32> to vector<16x512xf32>
    %90 = arith.subf %88, %89 : vector<16x512xf32>
    %91 = math.absf %90 : vector<16x512xf32>
    %cst_23 = arith.constant 1.000000e+00 : f32
    %92 = vector.broadcast %cst_23 : f32 to vector<16x512xf32>
    %93 = arith.subf %92, %91 : vector<16x512xf32>
    %cst_24 = arith.constant 0.000000e+00 : f32
    %94 = vector.broadcast %cst_24 : f32 to vector<16x512xf32>
    %95 = arith.maximumf %94, %93 : vector<16x512xf32>
    %96 = vector.extract_strided_slice %13 {offsets = [2, 0], sizes = [1, 512], strides = [1, 1]} : vector<3x512xf32> to vector<1x512xf32>
    %97 = tpu.iota {dimensions = array<i32: 0>} : vector<16x1xi32>
    %98 = arith.sitofp %97 : vector<16x1xi32> to vector<16x1xf32>
    %cst_25 = arith.constant 1.500000e+01 : f32
    %99 = vector.broadcast %cst_25 : f32 to vector<1x512xf32>
    %100 = arith.mulf %96, %99 : vector<1x512xf32>
    %101 = vector.broadcast %100 : vector<1x512xf32> to vector<16x512xf32>
    %102 = vector.broadcast %98 : vector<16x1xf32> to vector<16x512xf32>
    %103 = arith.subf %101, %102 : vector<16x512xf32>
    %104 = math.absf %103 : vector<16x512xf32>
    %cst_26 = arith.constant 1.000000e+00 : f32
    %105 = vector.broadcast %cst_26 : f32 to vector<16x512xf32>
    %106 = arith.subf %105, %104 : vector<16x512xf32>
    %cst_27 = arith.constant 0.000000e+00 : f32
    %107 = vector.broadcast %cst_27 : f32 to vector<16x512xf32>
    %108 = arith.maximumf %107, %106 : vector<16x512xf32>
    %109 = vector.extract_strided_slice %13 {offsets = [0, 0], sizes = [1, 512], strides = [1, 1]} : vector<3x512xf32> to vector<1x512xf32>
    %110 = tpu.iota {dimensions = array<i32: 0>} : vector<16x1xi32>
    %111 = arith.sitofp %110 : vector<16x1xi32> to vector<16x1xf32>
    %cst_28 = arith.constant 1.500000e+01 : f32
    %112 = vector.broadcast %cst_28 : f32 to vector<1x512xf32>
    %113 = arith.mulf %109, %112 : vector<1x512xf32>
    %114 = vector.broadcast %113 : vector<1x512xf32> to vector<16x512xf32>
    %115 = vector.broadcast %111 : vector<16x1xf32> to vector<16x512xf32>
    %116 = arith.subf %114, %115 : vector<16x512xf32>
    %117 = math.absf %116 : vector<16x512xf32>
    %cst_29 = arith.constant 1.000000e+00 : f32
    %118 = vector.broadcast %cst_29 : f32 to vector<16x512xf32>
    %119 = arith.subf %118, %117 : vector<16x512xf32>
    %cst_30 = arith.constant 0.000000e+00 : f32
    %120 = vector.broadcast %cst_30 : f32 to vector<16x512xf32>
    %121 = arith.maximumf %120, %119 : vector<16x512xf32>
    %122 = vector.extract_strided_slice %13 {offsets = [1, 0], sizes = [1, 512], strides = [1, 1]} : vector<3x512xf32> to vector<1x512xf32>
    %123 = tpu.iota {dimensions = array<i32: 0>} : vector<16x1xi32>
    %124 = arith.sitofp %123 : vector<16x1xi32> to vector<16x1xf32>
    %cst_31 = arith.constant 1.500000e+01 : f32
    %125 = vector.broadcast %cst_31 : f32 to vector<1x512xf32>
    %126 = arith.mulf %122, %125 : vector<1x512xf32>
    %127 = vector.broadcast %126 : vector<1x512xf32> to vector<16x512xf32>
    %128 = vector.broadcast %124 : vector<16x1xf32> to vector<16x512xf32>
    %129 = arith.subf %127, %128 : vector<16x512xf32>
    %130 = math.absf %129 : vector<16x512xf32>
    %cst_32 = arith.constant 1.000000e+00 : f32
    %131 = vector.broadcast %cst_32 : f32 to vector<16x512xf32>
    %132 = arith.subf %131, %130 : vector<16x512xf32>
    %cst_33 = arith.constant 0.000000e+00 : f32
    %133 = vector.broadcast %cst_33 : f32 to vector<16x512xf32>
    %134 = arith.maximumf %133, %132 : vector<16x512xf32>
    %135 = vector.extract_strided_slice %13 {offsets = [1, 0], sizes = [1, 512], strides = [1, 1]} : vector<3x512xf32> to vector<1x512xf32>
    %136 = tpu.iota {dimensions = array<i32: 0>} : vector<16x1xi32>
    %137 = arith.sitofp %136 : vector<16x1xi32> to vector<16x1xf32>
    %cst_34 = arith.constant 1.500000e+01 : f32
    %138 = vector.broadcast %cst_34 : f32 to vector<1x512xf32>
    %139 = arith.mulf %135, %138 : vector<1x512xf32>
    %140 = vector.broadcast %139 : vector<1x512xf32> to vector<16x512xf32>
    %141 = vector.broadcast %137 : vector<16x1xf32> to vector<16x512xf32>
    %142 = arith.subf %140, %141 : vector<16x512xf32>
    %143 = math.absf %142 : vector<16x512xf32>
    %cst_35 = arith.constant 1.000000e+00 : f32
    %144 = vector.broadcast %cst_35 : f32 to vector<16x512xf32>
    %145 = arith.subf %144, %143 : vector<16x512xf32>
    %cst_36 = arith.constant 0.000000e+00 : f32
    %146 = vector.broadcast %cst_36 : f32 to vector<16x512xf32>
    %147 = arith.maximumf %146, %145 : vector<16x512xf32>
    %148 = vector.extract_strided_slice %13 {offsets = [2, 0], sizes = [1, 512], strides = [1, 1]} : vector<3x512xf32> to vector<1x512xf32>
    %149 = tpu.iota {dimensions = array<i32: 0>} : vector<16x1xi32>
    %150 = arith.sitofp %149 : vector<16x1xi32> to vector<16x1xf32>
    %cst_37 = arith.constant 1.500000e+01 : f32
    %151 = vector.broadcast %cst_37 : f32 to vector<1x512xf32>
    %152 = arith.mulf %148, %151 : vector<1x512xf32>
    %153 = vector.broadcast %152 : vector<1x512xf32> to vector<16x512xf32>
    %154 = vector.broadcast %150 : vector<16x1xf32> to vector<16x512xf32>
    %155 = arith.subf %153, %154 : vector<16x512xf32>
    %156 = math.absf %155 : vector<16x512xf32>
    %cst_38 = arith.constant 1.000000e+00 : f32
    %157 = vector.broadcast %cst_38 : f32 to vector<16x512xf32>
    %158 = arith.subf %157, %156 : vector<16x512xf32>
    %cst_39 = arith.constant 0.000000e+00 : f32
    %159 = vector.broadcast %cst_39 : f32 to vector<16x512xf32>
    %160 = arith.maximumf %159, %158 : vector<16x512xf32>
    %161 = tpu.concatenate %95, %121, %147 in 0 : vector<16x512xf32>, vector<16x512xf32>, vector<16x512xf32> -> vector<48x512xf32>
    %162 = tpu.concatenate %108, %134, %160 in 0 : vector<16x512xf32>, vector<16x512xf32>, vector<16x512xf32> -> vector<48x512xf32>
    %c0_40 = arith.constant 0 : index
    %c0_41 = arith.constant 0 : index
    %c0_42 = arith.constant 0 : index
    %163 = vector.load %arg4[%c0_40, %c0_41, %c0_42] : memref<1x48x48xf32, #tpu.memory_space<vmem>>, vector<1x48x48xf32>
    %164 = vector.shape_cast %163 : vector<1x48x48xf32> to vector<48x48xf32>
    %cst_43 = arith.constant dense<0.000000e+00> : vector<48x512xf32>
    %165 = tpu.matmul %164, %161, %cst_43 {dimension_numbers = #tpu.dot_dimension_numbers<[1], [0], [0], [1], [0, 0, 1, 1], [], []>} : vector<48x48xf32>, vector<48x512xf32>, vector<48x512xf32> -> vector<48x512xf32>
    %166 = arith.mulf %165, %162 : vector<48x512xf32>
    %cst_44 = arith.constant dense<0.000000e+00> : vector<512xf32>
    %167 = vector.multi_reduction <add>, %166, %cst_44 [0] : vector<48x512xf32> to vector<512xf32>
    %168 = vector.shape_cast %167 : vector<512xf32> to vector<1x512xf32>
    %169 = arith.addf %82, %168 : vector<1x512xf32>
    %170 = vector.shape_cast %169 : vector<1x512xf32> to vector<1x1x512xf32>
    %c0_45 = arith.constant 0 : index
    %c0_46 = arith.constant 0 : index
    %c0_47 = arith.constant 0 : index
    %171 = vector.load %arg6[%c0_45, %c0_46, %c0_47] : memref<1x1x512xf32, #tpu.memory_space<vmem>>, vector<1x1x512xf32>
    tpu.vector_store %arg6[%c0_45, %c0_46, %c0_47], %170 {strides = array<i32>} : memref<1x1x512xf32, #tpu.memory_space<vmem>>, vector<1x1x512xf32>,
    return
  }
  func.func @transform_0(%arg0: i32, %arg1: i32) -> (i32, i32, i32) {
    %c0_i32 = arith.constant 0 : i32
    %c0_i32_0 = arith.constant 0 : i32
    return %arg0, %c0_i32, %arg1 : i32, i32, i32
  }
  func.func @transform_1(%arg0: i32, %arg1: i32) -> (i32, i32, i32) {
    %c0_i32 = arith.constant 0 : i32
    %c0_i32_0 = arith.constant 0 : i32
    %c0_i32_1 = arith.constant 0 : i32
    return %arg0, %c0_i32, %c0_i32_0 : i32, i32, i32
  }
  func.func @transform_2(%arg0: i32, %arg1: i32) -> (i32, i32, i32) {
    %c0_i32 = arith.constant 0 : i32
    %c0_i32_0 = arith.constant 0 : i32
    %c0_i32_1 = arith.constant 0 : i32
    return %arg0, %c0_i32, %c0_i32_0 : i32, i32, i32
  }
  func.func @transform_3(%arg0: i32, %arg1: i32) -> i32 {
    %c0_i32 = arith.constant 0 : i32
    %c0_i32_0 = arith.constant 0 : i32
    return %c0_i32 : i32
  }
  func.func @transform_4(%arg0: i32, %arg1: i32) -> (i32, i32, i32) {
    %c0_i32 = arith.constant 0 : i32
    %c0_i32_0 = arith.constant 0 : i32
    return %arg0, %c0_i32, %arg1 : i32, i32, i32
  }
}

</mosaic_0001>

<bundles_post_ra>
// kernel: tpu_custom_call.1
= control target key start
LH: loop header
LB: loop body
LE: loop exit
PB: predicated region body
PF: predicated region fallthrough
CT: control target
= control target key end

     0   :  { %s2090_s0 = inlined_call_operand.vmem [shape: f32[2,3,512], index: 0, kind: input, shape index: {}]   ;;  %s2091_s1 = inlined_call_operand.vmem [shape: f32[2,8,64], index: 1, kind: input, shape index: {}]   ;;  %s2092_s2 = inlined_call_operand.hbm [shape: f32[2,48,48], index: 2, kind: input, shape index: {}]   ;;  %s2093_s3 = inlined_call_operand.vmem [shape: f32[4], index: 3, kind: input, shape index: {}]   ;;  %s2094_s4 = inlined_call_operand.hbm [shape: f32[2,1,512], index: 4, kind: output, shape index: {}]  }
   0x1   :  { %2097 = sst [smem:[#allocation12_spill]] %s2093_s3 }
   0x2   :  { %9 = vsyncpa [#allocation3], 0 }
   0x3   :  { %11 = vsyncpa [#allocation3 + $0x1], 0 }
   0x4   :  { %12 = vsyncpa [#allocation5], 0 }
   0x5   :  { %13 = vsyncpa [#allocation4], 0 }
   0x6   :  { %15 = vsyncpa [#allocation4 + $0x1], 0  ;;  %s1557_s15 = smov 0   ;;  %s1559_s16 = smov 0  }
   0x7   :  { %s1561_s17 = smov 0   ;;  %s1563_s18 = smov 0  }
   0x8   :  { %s1565_s19 = smov 0   ;;  %s1567_s20 = smov 0  }
   0x9 LB: > { %2098 = sst [smem:[#allocation11_spill]] %s1526_s20  ;;  %s1261_s21 = sadd.s32 4294967295, %s1526_s20   ;;  %s1526_s20 = sphi %s1567_s20, %s21_s20   ;;  %s1522_s19 = sphi %s1565_s19, %s2112_s19   ;;  %s1518_s18 = sphi %s1563_s18, %s2111_s18   ;;  %s1514_s17 = sphi %s1561_s17, %s2110_s17   ;;  %s1510_s16 = sphi %s1559_s16, %s2109_s16   ;;  %s1506_s15 = sphi %s1557_s15, %s2108_s15  }
   0xa   : > { %s1262_s22 = sadd.s32 4294967294, %s1526_s20   ;;  %s94_s23 = sadd.s32 1, %s1514_s17 }
   0xb   : > { %p101_p0 = scmp.ne.s32.totalorder %s1514_s17, %s1510_s16  ;;  %p102_p1 = scmp.eq.s32.totalorder %s1526_s20, 0 }
   0xc   : > { %p107_p2 = scmp.ne.s32.totalorder %s1510_s16, %s1506_s15  ;;  %p1595_p3 = scmp.eq.s32.totalorder %s1261_s21, 0 }
   0xd   : > { %p154_p4 = scmp.eq.s32.totalorder %s1261_s21, 1  ;;  %p1599_p5 = por %p102_p1, %p101_p0 }
   0xe   : > { %p160_p6 = scmp.eq.s32.totalorder %s1262_s22, 1  ;;  %p1605_p7 = por %p1595_p3, %p107_p2 }
   0xf   : > { %p1609_p8 = por %p154_p4, %p101_p0  ;;  %p1263_p10 = scmp.ge.s32.totalorder %s1526_s20, 1 }
  0x10   : > { %p1613_p9 = por %p160_p6, %p107_p2  ;;  %p167_p11 = scmp.lt.s32.totalorder %s1526_s20, 3 }
  0x11   : > { %s2104_s3 = sld [smem:[#allocation12_spill]]  ;;  %p1265_p13 = scmp.ge.s32.totalorder %s1526_s20, 2 }
  0x12   : > { %p1622_p12 = pnand %p1263_p10, %p167_p11  ;;  %p1337_p0 = scmp.lt.s32.totalorder %s1526_s20, 2 }
  0x13   : > { %s33_s8 = sadd.s32 1, %s1522_s19  ;;  %s210_s9 = sand.u32 1, %s1514_s17  }
  0x14   : > { %p1324_p1 = pneg %p1622_p12  ;;  %p1632_p2 = pnand %p1337_p0, %p1599_p5 }
  0x15   : > { %p35_p6 = scmp.ge.s32.totalorder %s33_s8, 2  ;;  %s1528_s10 = smov [#allocation6]  }
  0x16   : > { %p1325_p4 = pnand %p1324_p1, %p1595_p3  ;;  %s1313_s11 = smul.u32 48, %s210_s9 }
  0x17   : > { %s179_s5 = sshll.u32 %s2104_s3, 4  ;;  %s2114_s8 = smov (%p35_p6, %s33_s8), 0  ;;  %s180_s5 = int_to_ptr.vmem [resolvable:$true] %s179_s5 }
  0x18   : > { %1327 = dma.vmem_to_smem (!%p1325_p4), %s180_s5, 16, %s1528_s10, [#allocation5]  }
  0x19   : > { %s91_s12 = ssub.s32 %s1522_s19, %s2114_s8  ;;  %s1314_s13 = smul.u32 48, %s1522_s19 }
  0x1a   : > { %p92_p10 = scmp.eq.s32.totalorder %s91_s12, 0  ;;  %s214_s25 = scalar_lea.vmem [#allocation2], %s1313_s11 }
  0x1b   : > { %s219_s22 = scalar_lea.hbm %s2092_s2, %s1314_s13  ;;  %s222_s29 = sshll.u32 %s214_s25, 4  ;;  %s223_s29 = int_to_ptr.vmem [resolvable:$true] %s222_s29 }
  0x1c   : > { %s1651_s30 = scalar_select %p92_p10, %s1514_s17, %s94_s23  }
  0x1d   : > { %s220_s3 = sshll.u32 %s219_s22, 4  ;;  %s211_s5 = scalar_lea.sflag [#allocation3], %s210_s9  ;;  %s221_s3 = int_to_ptr.hbm [resolvable:$true] %s220_s3 }
  0x1e   : > { %s1529_s10 = smov 128   ;;  %s1530_s20 = smov 8  }
  0x1f   : > { %1331 = dma.hbm_to_vmem [thread:$0]  (!%p1632_p2), %s221_s3, 768, %s223_s29, %s211_s5, %s1529_s10, %s1529_s10, %s1530_s20  }
  0x20   : > { %234 = sbr.rel (%p1622_p12) target bundleno = 337 (0x151), region = 36  ;;  %s1658_s12 = sand.u32 (!%p1622_p12), 1, %s1510_s16  }
  0x21   : > { %s1315_s11 = smul.u32 (!%p1622_p12), 48, %s1658_s12  ;;  %s237_s23 = scalar_lea.sflag (!%p1622_p12), [#allocation3], %s1658_s12 }
  0x23   : > { %s1662_s13 = scalar_lea.vmem (!%p1622_p12), [#allocation2], %s1315_s11 }
  0x25   : > { %1493 = dma.done.wait (%p1605_p7), %s237_s23, 768  }
  0x26   : > { %1495 = vsyncadd (%p1605_p7), %s237_s23, 4294966528 }
  0x27   : > { %1497 = dma.done.wait (%p1595_p3), [#allocation5], 16  }
  0x28   : > { %1499 = vsyncadd (%p1595_p3), [#allocation5], 4294967280 }
  0x29   : > { %251 = sfence }
  0x2a   : > { %p286_p5 = scmp.lt.s32.totalorder %s1518_s18, 1  ;;  %v1531_v0 = vmov 1.101   ;;  %v357_v11 = vlaneseq  ;;  %vm487_vm5 = vcmask 1046528   ;;  %vm481_vm6 = vcmask 1046534   ;;  %s1946_s22 = sld [smem:[#allocation6]] }
  0x2b   : > { %1392 = vrcp.f32 %v1531_v0  ;;  %vm475_vm7 = vcmask 1045509   ;;  %vm469_vm8 = vcmask 1044484   ;;  %vm461_vm9 = vcmask 1041409   ;;  %s1955_s25 = sld [smem:[#allocation6 + $0x1]]  ;;  %s1269_s10 = sshll.u32 %s1658_s12, 2 }
  0x2c   : > { %s1674_s3 = scalar_select %p286_p5, %s1518_s18, 1  ;;  %v1691_v16 = vshrl.u32 %v357_v11, 7  ;;  %vm455_vm10 = vcmask 1040384   ;;  %vm499_vm11 = vcmask 1046529   ;;  %vm494_vm12 = vcmask 1045504  }
  0x2d   : > { %vm489_vm13 = vcmask 1046533   ;;  %vm483_vm14 = vcmask 1045508   ;;  %vm463_vm15 = vcmask 1043459   ;;  %s1961_s29 = sld [smem:[#allocation6 + $0x2]]  ;;  %s1309_s11 = sshll.u32 %s1518_s18, 2 }
  0x2e   : > { %s1312_s20 = sshll.u32 %s1674_s3, 4  ;;  %v1701_v21 = vcvt.s32.f32 %v1691_v16  ;;  %s1272_s24 = sshll.u32 %s1674_s3, 3 }
  0x2f   : > { %s1680_s7 = scalar_lea.vmem %s2090_s0, %s1312_s20  ;;  %s298_s21 = scalar_lea.vmem %s2091_s1, %s1272_s24 }
  0x30   : > { %v1683_v5 = vld [vmem:[%s1680_s7] sm:$0x77]  ;;  %v1686_v6 = vld [vmem:[%s1680_s7 + $0x8] sm:$0x77]  ;;  %s2026_s5 = sld [smem:[#allocation6 + $0x3]]  ;;  %s1134_s3 = scalar_lea.hbm %s2094_s4, %s1309_s11 }
  0x31   : > { %v1393_v1 = vpop.eup %1392  ;;  %s284_s20 = scalar_lea.vmem [#allocation7], %s1269_s10  ;;  %s1138_s6 = sshll.u32 %s1134_s3, 4  ;;  %s1139_s6 = int_to_ptr.hbm [resolvable:$true] %s1138_s6 }
  0x32   : > { %v303_v2 = vmul.f32 1.101, %v1393_v1  ;;  %vm307_vm0 = vweird.f32 %v1393_v1  ;;  %s1136_s26 = sshll.u32 %s284_s20, 4  ;;  %s1122_s18 = scalar_lea.sflag [#allocation4], %s1658_s12  ;;  %s1137_s26 = int_to_ptr.vmem [resolvable:$true] %s1136_s26 }
  0x34   : > { %v304_v3 = vsub.f32 1.0, %v303_v2 }
  0x36   : > { %v305_v4 = vmul.f32 %v1393_v1, %v304_v3 }
  0x38   : > { %v306_v7 = vadd.f32 %v1393_v1, %v305_v4 }
  0x3a   : > { %v308_v8 = vsel %vm307_vm0, %v1393_v1, %v306_v7  ;;  %vm457_vm0 = vcmask 1042434  }
  0x3b   : > { %v309_v9 = vmul.f32 %v308_v8, %v1683_v5  ;;  %v310_v10 = vmul.f32 %v308_v8, %v1686_v6 }
  0x3d   : > { %v311_v12 = vadd.f32 0.5, %v309_v9  ;;  %v312_v13 = vadd.f32 0.5, %v310_v10 }
  0x3f   : > { %vm313_vm1 = vcmp.ge.f32.partialorder %v311_v12, 1.0  ;;  %vm314_vm2 = vcmp.ge.f32.partialorder %v312_v13, 1.0 }
  0x40   : > { %v315_v14 = vsel %vm313_vm1, 0.999, %v311_v12  ;;  %v316_v15 = vsel %vm314_vm2, 0.999, %v312_v13  ;;  %v724_v13 = vadd.s32 8, %v1691_v16  ;;  %vm477_vm1 = vcmask 1044483  }
  0x41   : > { %vm317_vm3 = vcmp.lt.f32.partialorder %v315_v14, 0.0  ;;  %vm318_vm4 = vcmp.lt.f32.partialorder %v316_v15, 0.0  ;;  %vm471_vm2 = vcmask 1043458  }
  0x42   : > { %v319_v17 = vsel %vm317_vm3, 0.0, %v315_v14  ;;  %v1693_v18 = vsel %vm318_vm4, 0.0, %v316_v15  ;;  %vm465_vm3 = vcmask 1042433   ;;  %vm459_vm4 = vcmask 1041408  }
  0x43   : > { %v1695_v19 = vmul.f32 7.0, %v319_v17  ;;  %v1698_v20 = vmul.f32 7.0, %v1693_v18  ;;  %v1721_v2 = vmul.f32 15.0, %v319_v17 }
  0x45   : > { %v364_v22 = vperm.slane %v1695_v19, 0  ;;  %v392_v23 = vperm.slane %v1695_v19, 1  ;;  %v393_v24 = vperm.slane %v1695_v19, 5  ;;  %v394_v25 = vperm.slane %v1698_v20, 1 }
  0x46   : > { %v395_v26 = vperm.slane %v1698_v20, 5  ;;  %v365_v27 = vperm.slane %v1695_v19, 4  ;;  %v366_v28 = vperm.slane %v1698_v20, 0  ;;  %v367_v29 = vperm.slane %v1698_v20, 4 }
  0x47   : > { %v372_v30 = vperm.slane %v364_v22, 0  ;;  %v400_v31 = vperm.slane %v392_v23, 1  ;;  %v401_v32 = vperm.slane %v393_v24, 1  ;;  %v402_v33 = vperm.slane %v394_v25, 1 }
  0x48   : > { %v403_v34 = vperm.slane %v395_v26, 1  ;;  %v373_v35 = vperm.slane %v365_v27, 0  ;;  %v374_v36 = vperm.slane %v366_v28, 0  ;;  %v375_v37 = vperm.slane %v367_v29, 0 }
  0x49   : > { %v376_v38 = vsub.f32 %v372_v30, %v1701_v21  ;;  %v404_v39 = vsub.f32 %v400_v31, %v1701_v21  ;;  %v405_v40 = vsub.f32 %v401_v32, %v1701_v21  ;;  %v406_v41 = vsub.f32 %v402_v33, %v1701_v21 }
  0x4a   : > { %v407_v42 = vsub.f32 %v403_v34, %v1701_v21  ;;  %v377_v43 = vsub.f32 %v373_v35, %v1701_v21  ;;  %v378_v44 = vsub.f32 %v374_v36, %v1701_v21  ;;  %v379_v45 = vsub.f32 %v375_v37, %v1701_v21 }
  0x4b   : > { %v380_v46 = vand.u32 2147483647, %v376_v38  ;;  %v408_v47 = vand.u32 2147483647, %v404_v39  ;;  %v409_v48 = vand.u32 2147483647, %v405_v40 }
  0x4c   : > { %v410_v49 = vand.u32 2147483647, %v406_v41  ;;  %v411_v50 = vand.u32 2147483647, %v407_v42  ;;  %v381_v51 = vand.u32 2147483647, %v377_v43 }
  0x4d   : > { %v384_v52 = vsub.f32 1.0, %v380_v46  ;;  %v412_v53 = vsub.f32 1.0, %v408_v47  ;;  %v413_v54 = vsub.f32 1.0, %v409_v48  ;;  %v382_v55 = vand.u32 2147483647, %v378_v44 }
  0x4e   : > { %v414_v56 = vsub.f32 1.0, %v410_v49  ;;  %v415_v57 = vsub.f32 1.0, %v411_v50  ;;  %v385_v58 = vsub.f32 1.0, %v381_v51  ;;  %v383_v59 = vand.u32 2147483647, %v379_v45 }
  0x4f   : > { %v1719_v60 = vmax.f32 %v412_v53, 0.0  ;;  %v417_v61 = vmax.f32 %v413_v54, 0.0  ;;  %v386_v62 = vsub.f32 1.0, %v382_v55  ;;  %v1723_v3 = vmax.f32 %v384_v52, 0.0 }
  0x50   : > { %v418_v63 = vmax.f32 %v414_v56, 0.0  ;;  %v419_v0 = vmax.f32 %v415_v57, 0.0  ;;  %v387_v1 = vsub.f32 1.0, %v383_v59  ;;  %v1727_v7 = vmax.f32 %v385_v58, 0.0 }
  0x51   : > { %v1725_v4 = vrot.slane %v417_v61, 7  ;;  %v1729_v8 = vmax.f32 %v386_v62, 0.0 }
  0x52   : > { %v1731_v9 = vrot.slane %v418_v63, 6  ;;  %v1733_v10 = vrot.slane %v419_v0, 5  ;;  %v1735_v12 = vmax.f32 %v387_v1, 0.0 }
  0x53   : > { %v497_v14 = vsel %vm487_vm5, %v1725_v4, %v1719_v60  ;;  %v492_v15 = vsel %vm481_vm6, %v1719_v60, %v1725_v4  ;;  %v486_v17 = vsel %vm475_vm7, %v1719_v60, %v1725_v4  ;;  %v480_v22 = vsel %vm469_vm8, %v1719_v60, %v1725_v4 }
  0x54   : > { %v498_v16 = vsel %vm461_vm9, %v1731_v9, %v1733_v10  ;;  %v493_v23 = vsel %vm455_vm10, %v1731_v9, %v1733_v10  ;;  %v488_v24 = vsel %vm487_vm5, %v1733_v10, %v1731_v9  ;;  %v482_v25 = vsel %vm481_vm6, %v1731_v9, %v1733_v10 }
  0x55   : > { %v500_v26 = vsel %vm499_vm11, %v498_v16, %v497_v14  ;;  %v495_v27 = vsel %vm494_vm12, %v493_v23, %v492_v15  ;;  %v490_v28 = vsel %vm489_vm13, %v486_v17, %v488_v24  ;;  %v484_v29 = vsel %vm483_vm14, %v480_v22, %v482_v25 }
  0x56   : > { %v501_v30 = vrot.slane %v500_v26, 7  ;;  %v496_v31 = vrot.slane %v495_v27, 6  ;;  %v491_v32 = vrot.slane %v490_v28, 5  ;;  %v485_v33 = vrot.slane %v484_v29, 4 }
  0x57   : > { %v474_v34 = vsel %vm463_vm15, %v1719_v60, %v1725_v4  ;;  %v476_v35 = vsel %vm475_vm7, %v1731_v9, %v1733_v10  ;;  %v468_v36 = vsel %vm457_vm0, %v1719_v60, %v1725_v4  ;;  %v470_v37 = vsel %vm469_vm8, %v1731_v9, %v1733_v10 }
  0x58   : > { %v530_v38 = vperm.slane %v501_v30, 0  ;;  %v531_v39 = vperm.slane %v501_v30, 1  ;;  %v532_v40 = vperm.slane %v501_v30, 2  ;;  %v533_v41 = vperm.slane %v501_v30, 3 }
  0x59   : > { %v526_v42 = vperm.slane %v496_v31, 0  ;;  %v527_v43 = vperm.slane %v496_v31, 1  ;;  %v528_v44 = vperm.slane %v496_v31, 2  ;;  %v529_v45 = vperm.slane %v496_v31, 3 }
  0x5a   : > { %v594_v46 = vmul.f32 %v530_v38, %v1723_v3  ;;  %v595_v47 = vmul.f32 %v531_v39, %v1727_v7  ;;  %v596_v48 = vmul.f32 %v532_v40, %v1729_v8  ;;  %v597_v49 = vmul.f32 %v533_v41, %v1735_v12 }
  0x5b   : > { %v590_v50 = vmul.f32 %v526_v42, %v1723_v3  ;;  %v591_v51 = vmul.f32 %v527_v43, %v1727_v7  ;;  %v592_v52 = vmul.f32 %v528_v44, %v1729_v8  ;;  %v593_v53 = vmul.f32 %v529_v45, %v1735_v12 }
  0x5c   : > { %611 = vmatpush.msra.mxu0 %v594_v46  ;;  %631 = vmatpush.msra.mxu1 %v595_v47  ;;  %v522_v54 = vperm.slane %v491_v32, 0  ;;  %v523_v55 = vperm.slane %v491_v32, 1  ;;  %v524_v56 = vperm.slane %v491_v32, 2  ;;  %v525_v57 = vperm.slane %v491_v32, 3 }
  0x5d   : > { %651 = vmatpush.msra.mxu2 %v596_v48  ;;  %671 = vmatpush.msra.mxu3 %v597_v49  ;;  %v518_v58 = vperm.slane %v485_v33, 0  ;;  %v519_v59 = vperm.slane %v485_v33, 1  ;;  %v520_v61 = vperm.slane %v485_v33, 2  ;;  %v521_v62 = vperm.slane %v485_v33, 3 }
  0x5e   : > { %612 = vmatpush.msra.mxu0 %v590_v50  ;;  %632 = vmatpush.msra.mxu1 %v591_v51  ;;  %v586_v63 = vmul.f32 %v522_v54, %v1723_v3  ;;  %v587_v0 = vmul.f32 %v523_v55, %v1727_v7  ;;  %v588_v1 = vmul.f32 %v524_v56, %v1729_v8  ;;  %v1789_v14 = vcvt.s32.f32 %v724_v13 }
  0x5f   : > { %652 = vmatpush.msra.mxu2 %v592_v52  ;;  %672 = vmatpush.msra.mxu3 %v593_v53  ;;  %v589_v15 = vmul.f32 %v525_v57, %v1735_v12  ;;  %v582_v17 = vmul.f32 %v518_v58, %v1723_v3  ;;  %v583_v22 = vmul.f32 %v519_v59, %v1727_v7  ;;  %v818_v16 = vperm.slane %v1721_v2, 1 }
  0x60   : > { %613 = vmatpush.msra.mxu0 %v586_v63  ;;  %633 = vmatpush.msra.mxu1 %v587_v0  ;;  %v584_v23 = vmul.f32 %v520_v61, %v1729_v8  ;;  %v585_v24 = vmul.f32 %v521_v62, %v1735_v12  ;;  %v478_v25 = vsel %vm477_vm1, %v474_v34, %v476_v35  ;;  %v819_v13 = vperm.slane %v1721_v2, 5 }
  0x61   : > { %653 = vmatpush.msra.mxu2 %v588_v1  ;;  %673 = vmatpush.msra.mxu3 %v589_v15  ;;  %v479_v26 = vrot.slane %v478_v25, 3  ;;  %v472_v27 = vsel %vm471_vm2, %v468_v36, %v470_v37  ;;  %v462_v28 = vsel %vm461_vm9, %v1719_v60, %v1725_v4  ;;  %v464_v29 = vsel %vm463_vm15, %v1731_v9, %v1733_v10 }
  0x62   : > { %614 = vmatpush.msra.mxu0 %v582_v17  ;;  %634 = vmatpush.msra.mxu1 %v583_v22  ;;  %v473_v30 = vrot.slane %v472_v27, 2  ;;  %v466_v31 = vsel %vm465_vm3, %v462_v28, %v464_v29  ;;  %v456_v32 = vsel %vm455_vm10, %v1719_v60, %v1725_v4  ;;  %v458_v33 = vsel %vm457_vm0, %v1731_v9, %v1733_v10 }
  0x63   : > { %654 = vmatpush.msra.mxu2 %v584_v23  ;;  %674 = vmatpush.msra.mxu3 %v585_v24  ;;  %v514_v34 = vperm.slane %v479_v26, 0  ;;  %v515_v35 = vperm.slane %v479_v26, 1  ;;  %v516_v36 = vperm.slane %v479_v26, 2  ;;  %v517_v37 = vperm.slane %v479_v26, 3 }
  0x64   : > { %v510_v38 = vperm.slane %v473_v30, 0  ;;  %v511_v39 = vperm.slane %v473_v30, 1  ;;  %v512_v40 = vperm.slane %v473_v30, 2  ;;  %v513_v41 = vperm.slane %v473_v30, 3 }
  0x65   : > { %v578_v42 = vmul.f32 %v514_v34, %v1723_v3  ;;  %v579_v43 = vmul.f32 %v515_v35, %v1727_v7  ;;  %v580_v60 = vmul.f32 %v516_v36, %v1729_v8  ;;  %v581_v4 = vmul.f32 %v517_v37, %v1735_v12 }
  0x66   : > { %v574_v9 = vmul.f32 %v510_v38, %v1723_v3  ;;  %v575_v10 = vmul.f32 %v511_v39, %v1727_v7  ;;  %v576_v44 = vmul.f32 %v512_v40, %v1729_v8  ;;  %v577_v45 = vmul.f32 %v513_v41, %v1735_v12 }
  0x67   : > { %vm599_vm5 = vcmask 523264   ;;  %615 = vmatpush.msra.mxu0 %v578_v42  ;;  %635 = vmatpush.msra.mxu1 %v579_v43  ;;  %v467_v46 = vrot.slane %v466_v31, 1  ;;  %v460_v47 = vsel %vm459_vm4, %v456_v32, %v458_v33  ;;  %v826_v48 = vperm.slane %v818_v16, 1 }
  0x68   : > { %v827_v49 = vperm.slane %v819_v13, 1  ;;  %655 = vmatpush.msra.mxu2 %v580_v60  ;;  %675 = vmatpush.msra.mxu3 %v581_v4  ;;  %v502_v50 = vperm.slane %v460_v47, 0  ;;  %v503_v51 = vperm.slane %v460_v47, 1  ;;  %v504_v52 = vperm.slane %v460_v47, 2 }
  0x69   : > { %v505_v53 = vperm.slane %v460_v47, 3  ;;  %616 = vmatpush.msra.mxu0 %v574_v9  ;;  %636 = vmatpush.msra.mxu1 %v575_v10  ;;  %v506_v54 = vperm.slane %v467_v46, 0  ;;  %v507_v55 = vperm.slane %v467_v46, 1  ;;  %v508_v56 = vperm.slane %v467_v46, 2 }
  0x6a   : > { %v509_v57 = vperm.slane %v467_v46, 3  ;;  %656 = vmatpush.msra.mxu2 %v576_v44  ;;  %676 = vmatpush.msra.mxu3 %v577_v45  ;;  %v566_v58 = vmul.f32 %v502_v50, %v1723_v3  ;;  %v567_v59 = vmul.f32 %v503_v51, %v1727_v7  ;;  %v568_v61 = vmul.f32 %v504_v52, %v1729_v8 }
  0x6b   : > { %v1830_v62 = vmul.f32 15.0, %v1693_v18  ;;  %v570_v63 = vmul.f32 %v506_v54, %v1723_v3  ;;  %v571_v0 = vmul.f32 %v507_v55, %v1727_v7  ;;  %v572_v1 = vmul.f32 %v508_v56, %v1729_v8  ;;  %v598_v18 = vld [vmem:[%s298_s21] sm:$0xff]  ;;  %s1460_s21 = scalar_lea.hbm %s2094_s4, 8 }
  0x6c   : > { %v573_v15 = vmul.f32 %v509_v57, %v1735_v12  ;;  %v569_v17 = vmul.f32 %v505_v53, %v1735_v12  ;;  %v834_v22 = vsub.f32 %v826_v48, %v1789_v14  ;;  %v835_v16 = vsub.f32 %v827_v49, %v1789_v14 }
  0x6d   : > { %v820_v23 = vperm.slane %v1830_v62, 1  ;;  %617 = vmatpush.msra.mxu0 %v570_v63  ;;  %637 = vmatpush.msra.mxu1 %v571_v0  ;;  %v821_v24 = vperm.slane %v1830_v62, 5  ;;  %v830_v3 = vsub.f32 %v826_v48, %v1701_v21  ;;  %v831_v7 = vsub.f32 %v827_v49, %v1701_v21 }
  0x6e   : > { %v730_v8 = vperm.slane %v1721_v2, 0  ;;  %657 = vmatpush.msra.mxu2 %v572_v1  ;;  %677 = vmatpush.msra.mxu3 %v573_v15  ;;  %v842_v12 = vand.u32 2147483647, %v834_v22  ;;  %v843_v25 = vand.u32 2147483647, %v835_v16  ;;  %v731_v26 = vperm.slane %v1721_v2, 4 }
  0x6f   : > { %v828_v13 = vperm.slane %v820_v23, 1  ;;  %618 = vmatpush.msra.mxu0 %v566_v58  ;;  %638 = vmatpush.msra.mxu1 %v567_v59  ;;  %v829_v27 = vperm.slane %v821_v24, 1  ;;  %v838_v28 = vand.u32 2147483647, %v830_v3  ;;  %v839_v29 = vand.u32 2147483647, %v831_v7 }
  0x70   : > { %v738_v30 = vperm.slane %v730_v8, 0  ;;  %658 = vmatpush.msra.mxu2 %v568_v61  ;;  %678 = vmatpush.msra.mxu3 %v569_v17  ;;  %v850_v31 = vsub.f32 1.0, %v842_v12  ;;  %v851_v32 = vsub.f32 1.0, %v843_v25  ;;  %v739_v46 = vperm.slane %v731_v26, 0 }
  0x71   : > { %v836_v33 = vsub.f32 %v828_v13, %v1789_v14  ;;  %v832_v34 = vsub.f32 %v828_v13, %v1701_v21  ;;  %1282 = vmatmul.msk.f32.vlgmr.msra.gmra.mxu2 %vm599_vm5, %v598_v18  ;;  %1283 = vmatmul.msk.f32.vlgmr.msra.gmra.mxu3 %vm599_vm5, %v598_v18  ;;  %v837_v35 = vsub.f32 %v829_v27, %v1789_v14  ;;  %v846_v36 = vsub.f32 1.0, %v838_v28 }
  0x72   : > { %v847_v37 = vsub.f32 1.0, %v839_v29  ;;  %v833_v38 = vsub.f32 %v829_v27, %v1701_v21  ;;  %v1851_v39 = vmax.f32 %v850_v31, 0.0  ;;  %v1853_v40 = vmax.f32 %v851_v32, 0.0  ;;  %1280 = vmatmul.msk.f32.vlgmr.msra.gmra.mxu0 %vm599_vm5, %v598_v18  ;;  %1281 = vmatmul.msk.f32.vlgmr.msra.gmra.mxu1 %vm599_vm5, %v598_v18 }
  0x73   : > { %v844_v41 = vand.u32 2147483647, %v836_v33  ;;  %v840_v42 = vand.u32 2147483647, %v832_v34  ;;  %v845_v43 = vand.u32 2147483647, %v837_v35  ;;  %v746_v45 = vsub.f32 %v738_v30, %v1789_v14 }
  0x74   : > { %v1857_v60 = vmax.f32 %v846_v36, 0.0  ;;  %v1859_v4 = vmax.f32 %v847_v37, 0.0  ;;  %v841_v9 = vand.u32 2147483647, %v833_v38  ;;  %897 = vmatpush.msrb.mxu0 %v1851_v39  ;;  %932 = vmatpush.msrb.mxu1 %v1853_v40  ;;  %v732_v49 = vperm.slane %v1830_v62, 0  ;;  %v862_v37 = vld [vmem:[%s1662_s13] sm:$0xff] }
  0x75   : > { %v852_v10 = vsub.f32 1.0, %v844_v41  ;;  %v848_v44 = vsub.f32 1.0, %v840_v42  ;;  %v853_v47 = vsub.f32 1.0, %v845_v43  ;;  %v733_v50 = vperm.slane %v1830_v62, 4  ;;  %v863_v38 = vld [vmem:[%s1662_s13 + $0x8] sm:$0xff]  ;;  %v864_v41 = vld [vmem:[%s1662_s13 + $0x10] sm:$0xff] }
  0x76   : > { %v849_v48 = vsub.f32 1.0, %v841_v9  ;;  %898 = vmatpush.msrb.mxu0 %v1857_v60  ;;  %933 = vmatpush.msrb.mxu1 %v1859_v4  ;;  %v754_v53 = vand.u32 2147483647, %v746_v45  ;;  %v747_v54 = vsub.f32 %v739_v46, %v1789_v14  ;;  %v740_v57 = vperm.slane %v732_v49, 0  ;;  %v865_v42 = vld [vmem:[%s1662_s13 + $0x18] sm:$0xff]  ;;  %v866_v43 = vld [vmem:[%s1662_s13 + $0x20] sm:$0xff] }
  0x77   : > { %v1866_v51 = vmax.f32 %v852_v10, 0.0  ;;  %v1870_v52 = vmax.f32 %v848_v44, 0.0  ;;  %v1873_v55 = vmax.f32 %v853_v47, 0.0  ;;  %v741_v58 = vperm.slane %v733_v50, 0  ;;  %v867_v9 = vld [vmem:[%s1662_s13 + $0x28] sm:$0xff] }
  0x78   : > { %v1875_v56 = vmax.f32 %v849_v48, 0.0  ;;  %v762_v59 = vsub.f32 1.0, %v754_v53  ;;  %v755_v61 = vand.u32 2147483647, %v747_v54  ;;  %v742_v63 = vsub.f32 %v738_v30, %v1701_v21 }
  0x79   : > { %967 = vmatpush.msrb.mxu2 %v1866_v51  ;;  %v743_v0 = vsub.f32 %v739_v46, %v1701_v21  ;;  %1002 = vmatpush.msrb.mxu3 %v1873_v55  ;;  %v748_v1 = vsub.f32 %v740_v57, %v1789_v14  ;;  %v749_v15 = vsub.f32 %v741_v58, %v1789_v14  ;;  %vm868_vm6 = vcmask 392192  }
  0x7a   : > { %v744_v17 = vsub.f32 %v740_v57, %v1701_v21  ;;  %v745_v22 = vsub.f32 %v741_v58, %v1701_v21  ;;  %v770_v16 = vmax.f32 %v762_v59, 0.0  ;;  %v763_v23 = vsub.f32 1.0, %v755_v61 }
  0x7b   : > { %968 = vmatpush.msrb.mxu2 %v1870_v52  ;;  %v750_v18 = vand.u32 2147483647, %v742_v63  ;;  %v751_v24 = vand.u32 2147483647, %v743_v0  ;;  %1003 = vmatpush.msrb.mxu3 %v1875_v56  ;;  %v756_v3 = vand.u32 2147483647, %v748_v1 }
  0x7c   : > { %v757_v7 = vand.u32 2147483647, %v749_v15  ;;  %v752_v8 = vand.u32 2147483647, %v744_v17  ;;  %899 = vmatpush.msrb.mxu0 %v770_v16  ;;  %v771_v12 = vmax.f32 %v763_v23, 0.0  ;;  %v421_v45 = vperm.slane %v1695_v19, 6 }
  0x7d   : > { %v758_v25 = vsub.f32 1.0, %v750_v18  ;;  %v759_v13 = vsub.f32 1.0, %v751_v24  ;;  %v753_v26 = vand.u32 2147483647, %v745_v22  ;;  %v764_v27 = vsub.f32 1.0, %v756_v3 }
  0x7e   : > { %v765_v28 = vsub.f32 1.0, %v757_v7  ;;  %v760_v29 = vsub.f32 1.0, %v752_v8  ;;  %934 = vmatpush.msrb.mxu1 %v771_v12  ;;  %v420_v50 = vperm.slane %v1695_v19, 2  ;;  %v429_v53 = vperm.slane %v421_v45, 2 }
  0x7f   : > { %v766_v30 = vmax.f32 %v758_v25, 0.0  ;;  %v767_v31 = vmax.f32 %v759_v13, 0.0  ;;  %v761_v32 = vsub.f32 1.0, %v753_v26  ;;  %v772_v33 = vmax.f32 %v764_v27, 0.0 }
  0x80   : > { %v773_v34 = vmax.f32 %v765_v28, 0.0  ;;  %v768_v35 = vmax.f32 %v760_v29, 0.0  ;;  %v423_v54 = vperm.slane %v1698_v20, 6  ;;  %v428_v57 = vperm.slane %v420_v50, 2 }
  0x81   : > { %900 = vmatpush.msrb.mxu0 %v766_v30  ;;  %935 = vmatpush.msrb.mxu1 %v767_v31  ;;  %v769_v36 = vmax.f32 %v761_v32, 0.0  ;;  %v433_v58 = vsub.f32 %v429_v53, %v1701_v21  ;;  %v774_v61 = vperm.slane %v1721_v2, 2  ;;  %v422_v19 = vperm.slane %v1698_v20, 2 }
  0x82   : > { %969 = vmatpush.msrb.mxu2 %v772_v33  ;;  %1004 = vmatpush.msrb.mxu3 %v773_v34  ;;  %v431_v59 = vperm.slane %v423_v54, 2  ;;  %v432_v17 = vsub.f32 %v428_v57, %v1701_v21  ;;  %v775_v22 = vperm.slane %v1721_v2, 6  ;;  %v776_v25 = vperm.slane %v1830_v62, 2 }
  0x83   : > { %901 = vmatpush.msrb.mxu0 %v770_v16  ;;  %936 = vmatpush.msrb.mxu1 %v771_v12  ;;  %v437_v16 = vand.u32 2147483647, %v433_v58  ;;  %v782_v18 = vperm.slane %v774_v61, 2  ;;  %v430_v3 = vperm.slane %v422_v19, 2  ;;  %v777_v13 = vperm.slane %v1830_v62, 6 }
  0x84   : > { %970 = vmatpush.msrb.mxu2 %v768_v35  ;;  %1005 = vmatpush.msrb.mxu3 %v769_v36  ;;  %v435_v23 = vsub.f32 %v431_v59, %v1701_v21  ;;  %v436_v24 = vand.u32 2147483647, %v432_v17  ;;  %v783_v7 = vperm.slane %v775_v22, 2  ;;  %v326_v19 = vstv %s1955_s25 }
  0x85   : > { %902 = vmatpush.msrb.mxu0 %v766_v30  ;;  %937 = vmatpush.msrb.mxu1 %v767_v31  ;;  %v441_v8 = vsub.f32 1.0, %v437_v16  ;;  %v786_v26 = vsub.f32 %v782_v18, %v1701_v21  ;;  %v790_v20 = vsub.f32 %v782_v18, %v1789_v14  ;;  %v434_v62 = vsub.f32 %v430_v3, %v1701_v21 }
  0x86   : > { %971 = vmatpush.msrb.mxu2 %v772_v33  ;;  %1006 = vmatpush.msrb.mxu3 %v773_v34  ;;  %v439_v12 = vand.u32 2147483647, %v435_v23  ;;  %v791_v2 = vsub.f32 %v783_v7, %v1789_v14  ;;  %v440_v31 = vsub.f32 1.0, %v436_v24  ;;  %v787_v32 = vsub.f32 %v783_v7, %v1701_v21 }
  0x87   : > { %1284 = vmatmul.msk.f32.vlgmr.msrb.gmra.mxu0 %vm868_vm6, %v862_v37  ;;  %1290 = vmatmul.msk.f32.vlgmr.msrb.gmra.mxu1 %vm868_vm6, %v862_v37  ;;  %v445_v33 = vmax.f32 %v441_v8, 0.0  ;;  %v438_v53 = vand.u32 2147483647, %v434_v62  ;;  %v340_v24 = vstv %s1961_s29  ;;  %vm717_vm7 = vcmask 1043456  }
  0x88   : > { %972 = vmatpush.msrb.mxu2 %v768_v35  ;;  %1007 = vmatpush.msrb.mxu3 %v769_v36  ;;  %v443_v34 = vsub.f32 1.0, %v439_v12  ;;  %v784_v35 = vperm.slane %v776_v25, 2  ;;  %v785_v36 = vperm.slane %v777_v13, 2  ;;  %v444_v45 = vmax.f32 %v440_v31, 0.0 }
  0x89   : > { %1296 = vmatmul.msk.f32.vlgmr.msrb.gmra.mxu2 %vm868_vm6, %v862_v37  ;;  %1302 = vmatmul.msk.f32.vlgmr.msrb.gmra.mxu3 %vm868_vm6, %v862_v37  ;;  %v794_v37 = vand.u32 2147483647, %v786_v26  ;;  %v442_v25 = vsub.f32 1.0, %v438_v53  ;;  %v327_v26 = vmul.f32 %v326_v19, %v1683_v5  ;;  %v1988_v31 = vmul.f32 %v340_v24, %v1683_v5 }
  0x8a   : > { %v447_v54 = vmax.f32 %v443_v34, 0.0  ;;  %v788_v22 = vsub.f32 %v784_v35, %v1701_v21  ;;  %v789_v16 = vsub.f32 %v785_v36, %v1701_v21  ;;  %vm1118_vm8 = vcmp.lt.s32.totalorder %v357_v11, 512 }
  0x8b   : > { %v802_v57 = vsub.f32 1.0, %v794_v37  ;;  %v446_v37 = vmax.f32 %v442_v25, 0.0 }
  0x8c   : > { %v796_v62 = vand.u32 2147483647, %v788_v22 }
  0x8f   : > { %1285 = vmatmul.msk.f32.gmra.mxu0 %vm868_vm6, %v863_v38  ;;  %1291 = vmatmul.msk.f32.gmra.mxu1 %vm868_vm6, %v863_v38 }
  0x91   : > { %1297 = vmatmul.msk.f32.gmra.mxu2 %vm868_vm6, %v863_v38  ;;  %1303 = vmatmul.msk.f32.gmra.mxu3 %vm868_vm6, %v863_v38  ;;  %v798_v38 = vand.u32 2147483647, %v790_v20  ;;  %v810_v20 = vmax.f32 %v802_v57, 0.0 }
  0x93   : > { %v806_v58 = vsub.f32 1.0, %v798_v38 }
  0x97   : > { %1286 = vmatmul.msk.f32.gmra.mxu0 %vm868_vm6, %v864_v41  ;;  %1292 = vmatmul.msk.f32.gmra.mxu1 %vm868_vm6, %v864_v41 }
  0x99   : > { %1298 = vmatmul.msk.f32.gmra.mxu2 %vm868_vm6, %v864_v41  ;;  %1304 = vmatmul.msk.f32.gmra.mxu3 %vm868_vm6, %v864_v41  ;;  %v799_v41 = vand.u32 2147483647, %v791_v2  ;;  %v1981_v2 = vmax.f32 %v806_v58, 0.0 }
  0x9b   : > { %v807_v59 = vsub.f32 1.0, %v799_v41  ;;  %v1274_v41 = vrot.slane %v327_v26, 9 }
  0x9d   : > { %v1983_v21 = vmax.f32 %v807_v59, 0.0 }
  0x9f   : > { %1287 = vmatmul.msk.f32.gmra.mxu0 %vm868_vm6, %v865_v42  ;;  %1293 = vmatmul.msk.f32.gmra.mxu1 %vm868_vm6, %v865_v42 }
  0xa1   : > { %1299 = vmatmul.msk.f32.gmra.mxu2 %vm868_vm6, %v865_v42  ;;  %1305 = vmatmul.msk.f32.gmra.mxu3 %vm868_vm6, %v865_v42  ;;  %v792_v42 = vsub.f32 %v784_v35, %v1789_v14 }
  0xa7   : > { %1288 = vmatmul.msk.f32.gmra.mxu0 %vm868_vm6, %v866_v43  ;;  %1294 = vmatmul.msk.f32.gmra.mxu1 %vm868_vm6, %v866_v43 }
  0xa9   : > { %1300 = vmatmul.msk.f32.gmra.mxu2 %vm868_vm6, %v866_v43  ;;  %1306 = vmatmul.msk.f32.gmra.mxu3 %vm868_vm6, %v866_v43  ;;  %v795_v43 = vand.u32 2147483647, %v787_v32  ;;  %v797_v32 = vand.u32 2147483647, %v789_v16 }
  0xab   : > { %v803_v3 = vsub.f32 1.0, %v795_v43  ;;  %v805_v57 = vsub.f32 1.0, %v797_v32 }
  0xad   : > { %v811_v34 = vmax.f32 %v803_v3, 0.0 }
  0xaf   : > { %1289 = vmatmul.msk.f32.gmra.mxu0 %vm868_vm6, %v867_v9  ;;  %1295 = vmatmul.msk.f32.gmra.mxu1 %vm868_vm6, %v867_v9 }
  0xb1   : > { %1301 = vmatmul.msk.f32.gmra.mxu2 %vm868_vm6, %v867_v9  ;;  %1307 = vmatmul.msk.f32.gmra.mxu3 %vm868_vm6, %v867_v9  ;;  %v793_v9 = vsub.f32 %v785_v36, %v1789_v14  ;;  %v800_v14 = vand.u32 2147483647, %v792_v42 }
  0xb3   : > { %v801_v7 = vand.u32 2147483647, %v793_v9 }
  0xb5   : > { %v809_v35 = vsub.f32 1.0, %v801_v7 }
  0xb7   : > { %v2000_v16 = vmax.f32 %v809_v35, 0.0 }
  0xef   : > { %v1917_v10 = vpop.f32.mrf.mxu0  ;;  %v640_v44 = vpop.f32.mrf.mxu1 }
  0xf0   : > { %v684_v50 = vmul.f32 %v640_v44, %v445_v33  ;;  %v322_v44 = vstv %s1946_s22  ;;  %v683_v8 = vmul.f32 %v1917_v10, %v444_v45  ;;  %v808_v33 = vsub.f32 1.0, %v800_v14 }
  0xf1   : > { %v323_v10 = vmul.f32 %v322_v44, %v1683_v5  ;;  %v804_v5 = vsub.f32 1.0, %v796_v62  ;;  %v2012_v32 = vmul.f32 %v322_v44, %v1686_v6 }
  0xf2   : > { %v693_v12 = vrot.slane %v684_v50, 4  ;;  %v1997_v58 = vmax.f32 %v808_v33, 0.0 }
  0xf4   : > { %v1920_v46 = vpop.f32.mrf.mxu2  ;;  %v1922_v47 = vpop.f32.mrf.mxu3  ;;  %v694_v36 = vadd.f32 %v693_v12, %v684_v50 }
  0xf5   : > { %v686_v13 = vmul.f32 %v1922_v47, %v447_v54  ;;  %v687_v47 = vrot.slane %v683_v8, 4  ;;  %v1277_v54 = vrot.slane %v1988_v31, 10  ;;  %v685_v3 = vmul.f32 %v1920_v46, %v446_v37 }
  0xf6   : > { %v695_v14 = vrot.slane %v694_v36, 2 }
  0xf7   : > { %v705_v38 = vrot.slane %v686_v13, 4  ;;  %v699_v46 = vrot.slane %v685_v3, 4 }
  0xf9   : > { %v706_v7 = vadd.f32 %v705_v38, %v686_v13 }
 0x104   : > { %v1924_v48 = vpop.f32.mrf.mxu0  ;;  %v1926_v49 = vpop.f32.mrf.mxu1 }
 0x105   : > { %v1027_v42 = vmul.f32 %v1924_v48, %v810_v20  ;;  %v1028_v22 = vmul.f32 %v1926_v49, %v811_v34  ;;  %v2009_v49 = vadd.f32 %v1274_v41, %v323_v10 }
 0x10c   : > { %v1932_v63 = vpop.f32.mrf.mxu2  ;;  %v1934_v0 = vpop.f32.mrf.mxu3 }
 0x10d   : > { %v1936_v1 = vpop.f32.mrf.mxu0  ;;  %v1938_v15 = vpop.f32.mrf.mxu1 }
 0x10e   : > { %v1031_v43 = vmul.f32 %v1936_v1, %v1981_v2  ;;  %v1032_v9 = vmul.f32 %v1938_v15, %v1983_v21  ;;  %v688_v15 = vadd.f32 %v687_v47, %v683_v8 }
 0x110   : > { %v1051_v12 = vadd.f32 %v1031_v43, %v1027_v42  ;;  %v1062_v25 = vadd.f32 %v1032_v9, %v1028_v22  ;;  %v689_v35 = vrot.slane %v688_v15, 2 }
 0x114   : > { %v1951_v27 = vpop.f32.mrf.mxu2  ;;  %v1953_v28 = vpop.f32.mrf.mxu3 }
 0x115   : > { %v1957_v29 = vpop.f32.mrf.mxu0  ;;  %v1959_v30 = vpop.f32.mrf.mxu1  ;;  %v1033_v13 = vmul.f32 %v1951_v27, %v1997_v58 }
 0x116   : > { %v1035_v48 = vmul.f32 %v1957_v29, %v1857_v60  ;;  %v1036_v1 = vmul.f32 %v1959_v30, %v1859_v4  ;;  %v812_v60 = vmax.f32 %v804_v5, 0.0  ;;  %v813_v29 = vmax.f32 %v805_v57, 0.0 }
 0x118   : > { %v1052_v33 = vadd.f32 %v1051_v12, %v1035_v48  ;;  %v1063_v4 = vadd.f32 %v1062_v25, %v1036_v1  ;;  %v1029_v37 = vmul.f32 %v1932_v63, %v812_v60 }
 0x11a   : > { %v1073_v63 = vadd.f32 %v1033_v13, %v1029_v37  ;;  %v351_v13 = vadd.f32 %v1277_v54, %v2009_v49 }
 0x11c   : > { %v1967_v61 = vpop.f32.mrf.mxu2  ;;  %v1969_v17 = vpop.f32.mrf.mxu3 }
 0x11d   : > { %v913_v23 = vpop.f32.mrf.mxu0  ;;  %v948_v18 = vpop.f32.mrf.mxu1  ;;  %v1038_v27 = vmul.f32 %v1969_v17, %v1875_v56  ;;  %v328_v56 = vmul.f32 %v326_v19, %v1686_v6 }
 0x11e   : > { %v1039_v26 = vmul.f32 %v913_v23, %v1851_v39  ;;  %v1040_v62 = vmul.f32 %v948_v18, %v1853_v40  ;;  %v1034_v39 = vmul.f32 %v1953_v28, %v2000_v16  ;;  %v696_v40 = vadd.f32 %v695_v14, %v694_v36  ;;  %v1394_v14 = vld [vmem:[%s1680_s7 + $0x8] sm:$0x77]  ;;  %s1454_s7 = sshra.s32 %s1139_s6, 4  ;;  %s1455_s7 = int_to_ptr.hbm [resolvable:$true] %s1454_s7 }
 0x11f   : > { %v707_v23 = vrot.slane %v706_v7, 2  ;;  %v342_v12 = vmul.f32 %v1394_v14, %v340_v24  ;;  %s1456_s24 = scalar_lea.hbm %s1455_s7, 4  ;;  %p1461_p12 = scmp.lt.s32.totalorder %s1455_s7, %s2094_s4 }
 0x120   : > { %v1053_v18 = vadd.f32 %v1052_v33, %v1039_v26  ;;  %v1064_v10 = vadd.f32 %v1063_v4, %v1040_v62  ;;  %v697_v22 = vrot.slane %v696_v40, 1  ;;  %p1457_p3 = scmp.ne.s32.totalorder %s1455_s7, %s1456_s24  ;;  %p1462_p0 = scmp.lt.s32.totalorder %s1460_s21, %s1456_s24 }
 0x122   : > { %v698_v4 = vadd.f32 %v697_v22, %v696_v40  ;;  %p1458_p7 = pnand %p1457_p3, %p1609_p8  ;;  %p1463_p1 = por %p1462_p0, %p1461_p12 }
 0x124   : > { %v983_v45 = vpop.f32.mrf.mxu2  ;;  %v1018_v53 = vpop.f32.mrf.mxu3  ;;  %p1459_p11 = pneg %p1458_p7 }
 0x125   : > { %v916_v50 = vpop.f32.mrf.mxu0  ;;  %v951_v59 = vpop.f32.mrf.mxu1 }
 0x126   : > { %v1043_v30 = vmul.f32 %v916_v50, %v810_v20  ;;  %v1044_v8 = vmul.f32 %v951_v59, %v811_v34  ;;  %v1030_v20 = vmul.f32 %v1934_v0, %v813_v29  ;;  %v1037_v34 = vmul.f32 %v1967_v61, %v1870_v52  ;;  %p1464_p2 = pnand %p1463_p1, %p1459_p11 }
 0x127   : > { %v1041_v0 = vmul.f32 %v983_v45, %v1866_v51  ;;  %v1042_v52 = vmul.f32 %v1018_v53, %v1873_v55  ;;  %v700_v61 = vadd.f32 %v699_v46, %v685_v3  ;;  %v690_v59 = vadd.f32 %v689_v35, %v688_v15 }
 0x128   : > { %v1054_v28 = vadd.f32 %v1053_v18, %v1043_v30  ;;  %v1065_v36 = vadd.f32 %v1064_v10, %v1044_v8  ;;  %v1084_v9 = vadd.f32 %v1034_v39, %v1030_v20  ;;  %v1074_v57 = vadd.f32 %v1073_v63, %v1037_v34 }
 0x129   : > { %v708_v51 = vadd.f32 %v707_v23, %v706_v7  ;;  %v701_v53 = vrot.slane %v700_v61, 2  ;;  %v1275_v3 = vrot.slane %v328_v56, 9  ;;  %v691_v33 = vrot.slane %v690_v59, 1 }
 0x12a   : > { %v1075_v45 = vadd.f32 %v1074_v57, %v1041_v0  ;;  %v354_v7 = vstv %s2026_s5  ;;  %v1278_v10 = vrot.slane %v342_v12, 10 }
 0x12b   : > { %v709_v8 = vrot.slane %v708_v51, 1  ;;  %v702_v18 = vadd.f32 %v701_v53, %v700_v61  ;;  %v338_v40 = vadd.f32 %v1275_v3, %v2012_v32  ;;  %v355_v49 = vadd.f32 %v354_v7, %v351_v13 }
 0x12c   : > { %v986_v44 = vpop.f32.mrf.mxu2  ;;  %v1021_v47 = vpop.f32.mrf.mxu3 }
 0x12d   : > { %v919_v38 = vpop.f32.mrf.mxu0  ;;  %v954_v41 = vpop.f32.mrf.mxu1  ;;  %v1045_v50 = vmul.f32 %v986_v44, %v812_v60  ;;  %v710_v20 = vadd.f32 %v709_v8, %v708_v51 }
 0x12e   : > { %v1047_v42 = vmul.f32 %v919_v38, %v1981_v2  ;;  %v1048_v43 = vmul.f32 %v954_v41, %v1983_v21  ;;  %v1085_v2 = vadd.f32 %v1084_v9, %v1038_v27  ;;  %v1046_v21 = vmul.f32 %v1021_v47, %v813_v29 }
 0x12f   : > { %v1076_v62 = vadd.f32 %v1075_v45, %v1045_v50  ;;  %v715_v47 = vrot.slane %v698_v4, 4  ;;  %v716_v63 = vrot.slane %v710_v20, 4 }
 0x130   : > { %v1055_v17 = vadd.f32 %v1054_v28, %v1047_v42  ;;  %v1066_v5 = vadd.f32 %v1065_v36, %v1048_v43  ;;  %v1086_v55 = vadd.f32 %v1085_v2, %v1042_v52  ;;  %v703_v28 = vrot.slane %v702_v18, 1 }
 0x131   : > { %v352_v42 = vadd.f32 %v1278_v10, %v338_v40 }
 0x132   : > { %v1056_v48 = vrot.slane %v1055_v17, 4  ;;  %v1067_v1 = vrot.slane %v1066_v5, 4  ;;  %v1087_v60 = vadd.f32 %v1086_v55, %v1046_v21  ;;  %v704_v52 = vadd.f32 %v703_v28, %v702_v18 }
 0x133   : > { %v356_v57 = vadd.f32 %v354_v7, %v352_v42 }
 0x134   : > { %v1057_v6 = vadd.f32 %v1056_v48, %v1055_v17  ;;  %v1068_v19 = vadd.f32 %v1067_v1, %v1066_v5  ;;  %v989_v25 = vpop.f32.mrf.mxu2  ;;  %v1024_v26 = vpop.f32.mrf.mxu3  ;;  %v719_v2 = vsel %vm717_vm7, %v704_v52, %v716_v63 }
 0x135   : > { %v1049_v15 = vmul.f32 %v989_v25, %v1997_v58  ;;  %v1050_v29 = vmul.f32 %v1024_v26, %v2000_v16  ;;  %v692_v16 = vadd.f32 %v691_v33, %v690_v59  ;;  %v723_v48 = vadd.f32 %v719_v2, %v356_v57 }
 0x136   : > { %v1058_v30 = vrot.slane %v1057_v6, 2  ;;  %v1069_v24 = vrot.slane %v1068_v19, 2 }
 0x137   : > { %v1077_v35 = vadd.f32 %v1076_v62, %v1049_v15  ;;  %v1088_v46 = vadd.f32 %v1087_v60, %v1050_v29  ;;  %v718_v36 = vsel %vm717_vm7, %v692_v16, %v715_v47 }
 0x138   : > { %v1059_v39 = vadd.f32 %v1058_v30, %v1057_v6  ;;  %v1070_v23 = vadd.f32 %v1069_v24, %v1068_v19  ;;  %v722_v5 = vadd.f32 %v718_v36, %v355_v49 }
 0x139   : > { %v1078_v58 = vrot.slane %v1077_v35, 4  ;;  %v1089_v44 = vrot.slane %v1088_v46, 4 }
 0x13a   : > { %v1071_v37 = vrot.slane %v1070_v23, 1  ;;  %v1060_v34 = vrot.slane %v1059_v39, 1 }
 0x13b   : > { %v1079_v27 = vadd.f32 %v1078_v58, %v1077_v35  ;;  %v1090_v38 = vadd.f32 %v1089_v44, %v1088_v46 }
 0x13c   : > { %v1072_v41 = vadd.f32 %v1071_v37, %v1070_v23  ;;  %v1061_v9 = vadd.f32 %v1060_v34, %v1059_v39 }
 0x13d   : > { %v1080_v31 = vrot.slane %v1079_v27, 2  ;;  %v1091_v54 = vrot.slane %v1090_v38, 2 }
 0x13e   : > { %v1099_v43 = vrot.slane %v1072_v41, 4 }
 0x13f   : > { %v1081_v0 = vadd.f32 %v1080_v31, %v1079_v27  ;;  %v1092_v32 = vadd.f32 %v1091_v54, %v1090_v38 }
 0x140   : > { %v1101_v17 = vsel %vm717_vm7, %v1061_v9, %v1099_v43 }
 0x141   : > { %v1082_v61 = vrot.slane %v1081_v0, 1  ;;  %v1093_v56 = vrot.slane %v1092_v32, 1  ;;  %v1105_v21 = vadd.f32 %v1101_v17, %v722_v5 }
 0x143   : > { %v1094_v50 = vadd.f32 %v1093_v56, %v1092_v32  ;;  %v1083_v59 = vadd.f32 %v1082_v61, %v1081_v0  ;;  %v1109_v12 = vrot.slane %v1105_v21, 3 }
 0x145   : > { %v1100_v22 = vrot.slane %v1094_v50, 4  ;;  %v1112_v55 = vsel %vm455_vm10, %v1105_v21, %v1109_v12 }
 0x147   : > { %v1102_v1 = vsel %vm717_vm7, %v1083_v59, %v1100_v22 }
 0x148   : > { %v1106_v14 = vadd.f32 %v1102_v1, %v723_v48 }
 0x14a   : > { %v1110_v51 = vrot.slane %v1106_v14, 6  ;;  %v1111_v45 = vrot.slane %v1106_v14, 1 }
 0x14c   : > { %v1113_v53 = vsel %vm457_vm0, %v1110_v51, %v1111_v45 }
 0x14d   : > { %v1114_v3 = vsel %vm459_vm4, %v1112_v55, %v1113_v53 }
 0x14e   : > { %1120 = vst.msk [vmem:[%s284_s20] sm:$0xf] %vm1118_vm8, %v1114_v3 }
 0x14f   : > { %1467 = shalt.err (!%p1464_p2)
}
 0x150   : > { %1322 = dma.vmem_to_hbm [thread:$0]  (%p1609_p8), %s1137_s26, 64, %s1139_s6, %s1122_s18  }
 0x151 PF: > { %s2107_s12 = sld [smem:[#allocation11_spill]]  ;;  %s1150_s29 = sand.u32 1, %s1506_s15  }
 0x152   : > { %p1333_p4 = pnand %p1265_p13, %p1613_p9  ;;  %s1151_s5 = scalar_lea.sflag [#allocation4], %s1150_s29 }
 0x154   : > { %p1334_p6 = pneg %p1333_p4 }
 0x156   : > { %1501 = dma.done.wait (%p1334_p6), %s1151_s5, 64  }
 0x157   : > { %1503 = vsyncadd (%p1334_p6), %s1151_s5, 4294967232  ;;  %s21_s20 = sadd.s32 1, %s2107_s12   ;;  %s2108_s15 = smov %s1510_s16 }
 0x158   : > { %p18_p10 = scmp.ge.s32.totalorder %s21_s20, 4   ;;  %s2109_s16 = smov %s1514_s17 }
 0x159   : > { %s2110_s17 = smov %s1651_s30  ;;  %s2111_s18 = smov %s1522_s19 }
 0x15a   : > { %s2112_s19 = smov %s2114_s8  ;;  %20 = sbr.rel (!%p18_p10) target bundleno = 9 (0x9), region = 92 }
 0x15f   :  { %1157 = vsyncpa [#allocation3], 1 }
 0x160   :  { %1159 = vsyncpa [#allocation3 + $0x1], 1 }
 0x161   :  { %1160 = vsyncpa [#allocation4], 1 }
 0x162   :  { %1162 = vsyncpa [#allocation4 + $0x1], 1 }
 0x163   :  { %1163 = vsyncpa [#allocation5], 1 }
 0x164   :  { %1165 = vsyncpa [#allocation5 + $0x1], 1 }

</bundles_post_ra>
